<compile_context>
chip_gen: v7x
topology: tpu7x:2x2x1
jax: 0.10.0
libtpu: 0.0.40
codegen_flags: <defaults>
</compile_context>

<pallas_src>
import functools
import math

import jax
import jax.numpy as jnp
from jax.experimental import pallas as pl
from jax.experimental.pallas import tpu as pltpu


def _round_up(x, m):
    return ((x + m - 1) // m) * m


def _choose_row_tile(n, pref):
    """Row tile: multiple of 128, <= pref, and (when n allows) small enough
    that the 'parallel' row axis has >= 2 tiles for v7x megacore balance."""
    t = min(pref, _round_up(n, 128))
    while t > 128 and _round_up(n, t) // t < 2:
        t = _round_up(t // 2, 128)
    return max(t, 128)


# ----------------------------------------------------------------------------
# Phase 1: support = tanh(features @ Wc)   (Wc already folds the 0.9/0.1 blend)
# ----------------------------------------------------------------------------
def support_kernel(feat_ref, wc_ref, sup_ref):
    # f32 matmul + f32 tanh (v5e has no bf16 VPU/EUP), store bf16 for phase 2.
    s = jnp.tanh(
        jnp.dot(feat_ref[...], wc_ref[...], preferred_element_type=jnp.float32)
    )
    sup_ref[...] = s.astype(sup_ref.dtype)


# ----------------------------------------------------------------------------
# Phase 2: output = adj @ support   (bf16 MXU operands, f32 accumulation)
# ----------------------------------------------------------------------------
def spmm_kernel(adj_ref, sup_ref, out_ref, *, tk, support_resident):
    k = pl.program_id(1)

    # adj streamed in caller dtype (f32); cast on-chip (VPU, hidden under DMA).
    a = adj_ref[...].astype(jnp.bfloat16)

    if support_resident:
        # Whole support matrix is VMEM-resident; slice the k-th row block.
        start = pl.multiple_of(k * tk, tk)
        s = sup_ref[pl.ds(start, tk), :]
    else:
        s = sup_ref[...]

    contrib = jnp.dot(a, s, preferred_element_type=jnp.float32)

    # Accumulate directly into the f32 output block (its block index is
    # constant across k, so it stays VMEM-resident for the whole reduction).
    @pl.when(k == 0)
    def _():
        out_ref[...] = contrib

    @pl.when(k != 0)
    def _():
        out_ref[...] += contrib


def gnn_layer(features, adj, weight1, weight, *, tm=512, tk=512):
    n, f_in = features.shape
    f_out = weight.shape[1]
    assert adj.shape == (n, n)
    assert weight1.shape == (f_in, f_in)
    assert weight.shape[0] == f_in

    # ---- fold blend + both weight matmuls into one combined weight (pure JAX)
    wc = (0.9 * jnp.eye(f_in, dtype=jnp.float32)
          + 0.1 * weight1.astype(jnp.float32)) @ weight.astype(jnp.float32)

    # ---- lane-pad the output feature dim to a multiple of 128
    f_pad = max(128, _round_up(f_out, 128))
    wc_p = jnp.zeros((f_in, f_pad), jnp.float32).at[:, :f_out].set(wc)

    # ---- tiles (multiples of 128) and zero-padded node count
    tm = _choose_row_tile(n, tm)
    tk = max(128, min(tk, _round_up(n, 128)))
    n_pad = _round_up(n, math.lcm(tm, tk))

    feats = features.astype(jnp.float32)
    if n_pad != n:
        # Zero rows of features -> tanh(0)=0 support rows; zero adj rows/cols
        # -> padded output rows are zero and sliced off below.  Exact.
        feats = jnp.pad(feats, ((0, n_pad - n), (0, 0)))
        adj = jnp.pad(adj, ((0, n_pad - n), (0, n_pad - n)))

    vmem_limit = 32 * 1024 * 1024  # v7x-safe headroom (64 MiB physical)

    # ---- phase 1: support = tanh(F @ Wc) -> bf16, lane-dense (n_pad, f_pad)
    rb = math.gcd(n_pad, 2048)  # large row block, divides n_pad, >= 128
    support = pl.pallas_call(
        support_kernel,
        out_shape=jax.ShapeDtypeStruct((n_pad, f_pad), jnp.bfloat16),
        grid_spec=pltpu.PrefetchScalarGridSpec(
            num_scalar_prefetch=0,
            grid=(n_pad // rb,),
            in_specs=[
                pl.BlockSpec((rb, f_in), lambda i: (i, 0)),
                pl.BlockSpec((f_in, f_pad), lambda i: (0, 0)),  # tiny, resident
            ],
            out_specs=pl.BlockSpec((rb, f_pad), lambda i: (i, 0)),
        ),
        compiler_params=pltpu.CompilerParams(
            dimension_semantics=("parallel",),
            vmem_limit_bytes=vmem_limit,
        ),
    )(feats, wc_p)

    # ---- phase 2: output = adj @ support
    # Keep support fully VMEM-resident (one DMA total) when it fits; otherwise
    # stream per-k blocks.  Never re-streamed once per row tile.
    support_resident = (n_pad * f_pad * 2) <= 8 * 1024 * 1024
    if support_resident:
        sup_spec = pl.BlockSpec((n_pad, f_pad), lambda i, k: (0, 0))
    else:
        sup_spec = pl.BlockSpec((tk, f_pad), lambda i, k: (k, 0))

    out_padded = pl.pallas_call(
        functools.partial(spmm_kernel, tk=tk, support_resident=support_resident),
        out_shape=jax.ShapeDtypeStruct((n_pad, f_pad), jnp.float32),
        grid_spec=pltpu.PrefetchScalarGridSpec(
            num_scalar_prefetch=0,
            grid=(n_pad // tm, n_pad // tk),
            in_specs=[
                pl.BlockSpec((tm, tk), lambda i, k: (i, k)),  # adj stream (f32)
                sup_spec,
            ],
            out_specs=pl.BlockSpec((tm, f_pad), lambda i, k: (i, 0)),
        ),
        compiler_params=pltpu.CompilerParams(
            dimension_semantics=("parallel", "arbitrary"),
            vmem_limit_bytes=vmem_limit,
        ),
    )(adj, support)

    # slice off lane / node padding
    return out_padded[:n, :f_out]


def xavier_uniform(key, shape, dtype=jnp.float32):
    """Matches torch.nn.init.xavier_uniform_ for a 2-D (fan_in, fan_out) weight."""
    fan_in, fan_out = shape
    bound = math.sqrt(6.0 / (fan_in + fan_out))
    return jax.random.uniform(key, shape, dtype, minval=-bound, maxval=bound)


def gnn_layer_ref(features, adj, weight1, weight):
    """Pure-JAX f32 reference mirroring the PyTorch forward."""
    x1 = 0.9 * features + 0.1 * (features @ weight1)
    support = jnp.tanh(x1 @ weight)
    return adj @ support


if __name__ == "__main__":
    key = jax.random.PRNGKey(0)
    k_feat, k_adj, k_w1, k_w = jax.random.split(key, 4)

    N = 256            # number of graph nodes
    IN_FEATURES = 32
    OUT_FEATURES = 16

    features = jax.random.normal(k_feat, (N, IN_FEATURES), dtype=jnp.float32)

    # Synthetic row-normalized adjacency (dense stand-in for the sparse adj).
    raw = jax.random.uniform(k_adj, (N, N), dtype=jnp.float32)
    adj = (raw > 0.8).astype(jnp.float32) + jnp.eye(N, dtype=jnp.float32)
    adj = adj / jnp.sum(adj, axis=1, keepdims=True)

    weight1 = xavier_uniform(k_w1, (IN_FEATURES, IN_FEATURES))
    weight = xavier_uniform(k_w, (IN_FEATURES, OUT_FEATURES))

    # tm=tk=128 at N=256 exercises a real (2, 2) grid with the k-reduction and
    # the resident-support path; production sizes use the 512 defaults.
    out = gnn_layer(features, adj, weight1, weight, tm=128, tk=128)
    out = jax.block_until_ready(out)

    ref = gnn_layer_ref(features, adj, weight1, weight)
    assert out.shape == (N, OUT_FEATURES)
    # bf16 adj/support on the MXU loosens agreement vs the pure-f32 reference;
    # outputs are convex combinations of tanh values (|out| <= 1), so 2e-2 is ample.
    assert jnp.allclose(out, ref, atol=2e-2, rtol=2e-2), (
        float(jnp.max(jnp.abs(out - ref)))
    )

    print("KERNEL_OK")
</pallas_src>

<mosaic_0001>
module attributes {stable_mosaic.version = 11 : i64} {
  func.func @support_kernel(%arg0: i32, %arg1: memref<256x32xf32, #tpu.memory_space<vmem>>, %arg2: memref<32x128xf32, #tpu.memory_space<vmem>>, %arg3: memref<256x128xbf16, #tpu.memory_space<vmem>>) attributes {dimension_semantics = [#tpu.dimension_semantics<parallel>], iteration_bounds = array<i64: 1>, scalar_prefetch = 0 : i64, scratch_operands = 0 : i64, tpu.core_type = #tpu.core_type<tc>, window_params = [{transform_indices = @transform_0, window_bounds = array<i64: 256, 32>}, {pipeline_mode = #tpu.pipeline_mode<synchronous>, transform_indices = @transform_1, window_bounds = array<i64: 32, 128>}, {transform_indices = @transform_2, window_bounds = array<i64: 256, 128>}]} {
    %c0 = arith.constant 0 : index
    %c0_0 = arith.constant 0 : index
    %0 = vector.load %arg1[%c0, %c0_0] : memref<256x32xf32, #tpu.memory_space<vmem>>, vector<256x32xf32>
    %c0_1 = arith.constant 0 : index
    %c0_2 = arith.constant 0 : index
    %1 = vector.load %arg2[%c0_1, %c0_2] : memref<32x128xf32, #tpu.memory_space<vmem>>, vector<32x128xf32>
    %cst = arith.constant dense<0.000000e+00> : vector<256x128xf32>
    %2 = tpu.matmul %0, %1, %cst {dimension_numbers = #tpu.dot_dimension_numbers<[1], [0], [0], [1], [0, 0, 1, 1], [], []>} : vector<256x32xf32>, vector<32x128xf32>, vector<256x128xf32> -> vector<256x128xf32>
    %3 = math.tanh %2 : vector<256x128xf32>
    %4 = arith.truncf %3 : vector<256x128xf32> to vector<256x128xbf16>
    %c0_3 = arith.constant 0 : index
    %c0_4 = arith.constant 0 : index
    %5 = vector.load %arg3[%c0_3, %c0_4] : memref<256x128xbf16, #tpu.memory_space<vmem>>, vector<256x128xbf16>
    tpu.vector_store %arg3[%c0_3, %c0_4], %4 {strides = array<i32>} : memref<256x128xbf16, #tpu.memory_space<vmem>>, vector<256x128xbf16>,
    return
  }
  func.func @transform_0(%arg0: i32) -> (i32, i32) {
    %c0_i32 = arith.constant 0 : i32
    %c0_i32_0 = arith.constant 0 : i32
    return %arg0, %c0_i32 : i32, i32
  }
  func.func @transform_1(%arg0: i32) -> (i32, i32) {
    %c0_i32 = arith.constant 0 : i32
    %c0_i32_0 = arith.constant 0 : i32
    %c0_i32_1 = arith.constant 0 : i32
    return %c0_i32, %c0_i32_0 : i32, i32
  }
  func.func @transform_2(%arg0: i32) -> (i32, i32) {
    %c0_i32 = arith.constant 0 : i32
    %c0_i32_0 = arith.constant 0 : i32
    return %arg0, %c0_i32 : i32, i32
  }
}

</mosaic_0001>

<bundles_post_ra>
// kernel: tpu_custom_call.1
= control target key start
LH: loop header
LB: loop body
LE: loop exit
PB: predicated region body
PF: predicated region fallthrough
CT: control target
= control target key end

     0   :  { %vm48_vm0 = vcmask 261120   ;;  %s1134_s0 = inlined_call_operand.vmem [shape: f32[256,32], index: 0, kind: input, shape index: {}]   ;;  %s1135_s1 = inlined_call_operand.vmem [shape: f32[32,128], index: 1, kind: input, shape index: {}]   ;;  %s1136_s2 = inlined_call_operand.hbm [shape: bf16[256,128], index: 2, kind: output, shape index: {}]  }
   0x1   :  { %v44_v0 = vld [vmem:[%s1135_s1] sm:$0xff]  ;;  %v45_v1 = vld [vmem:[%s1135_s1 + $0x8] sm:$0xff]  ;;  %v46_v2 = vld [vmem:[%s1135_s1 + $0x10] sm:$0xff] }
   0x2   :  { %v861_v3 = vpack.c.bf16 %v45_v1, %v44_v0  ;;  %v47_v4 = vld [vmem:[%s1135_s1 + $0x18] sm:$0xff]  ;;  %v12_v5 = vld [vmem:[%s1134_s0] sm:$0xff]  ;;  %v13_v8 = vld [vmem:[%s1134_s0 + $0x8] sm:$0xff] }
   0x3   :  { %v28_v6 = vld [vmem:[%s1134_s0 + $0x80] sm:$0xff]  ;;  %v865_v7 = vpack.c.bf16 %v47_v4, %v46_v2  ;;  %813 = vmatprep.mubr.msk.f32.mxu0 %vm48_vm0, %v12_v5  ;;  %v29_v9 = vld [vmem:[%s1134_s0 + $0x88] sm:$0xff]  ;;  %v14_v10 = vld [vmem:[%s1134_s0 + $0x10] sm:$0xff] }
   0x4   :  { %837 = vmatprep.mubr.msk.f32.mxu1 %vm48_vm0, %v28_v6  ;;  %862 = vmatprep.subr.bf16.mxu0 %v861_v3  ;;  %v30_v11 = vld [vmem:[%s1134_s0 + $0x90] sm:$0xff]  ;;  %v15_v12 = vld [vmem:[%s1134_s0 + $0x18] sm:$0xff] }
   0x5   :  { %869 = vmatprep.subr.bf16.mxu1 %v861_v3  ;;  %864 = vmatpush3.bf16.msra.mxu0 %v861_v3  ;;  %v31_v13 = vld [vmem:[%s1134_s0 + $0x98] sm:$0xff] }
   0x6   :  { %871 = vmatpush3.bf16.msra.mxu1 %v861_v3  ;;  %866 = vmatprep.subr.bf16.mxu0 %v865_v7 }
   0x7   :  { %870 = vmatprep.subr.bf16.mxu1 %v865_v7 }
   0x9   :  { %868 = vmatpush3.bf16.msra.mxu0 %v865_v7 }
   0xa   :  { %872 = vmatpush3.bf16.msra.mxu1 %v865_v7 }
   0xc   :  { %814 = vmatmul.mubr.msk.f32.vlgmr.msra.gmra.mrb[0].mxu0 %vm48_vm0, %v13_v8 }
   0xd   :  { %838 = vmatmul.mubr.msk.f32.vlgmr.msra.gmra.mrb[0].mxu1 %vm48_vm0, %v29_v9  ;;  %816 = vmatprep.mubr.msk.f32.mxu0 %vm48_vm0, %v14_v10 }
   0xe   :  { %840 = vmatprep.mubr.msk.f32.mxu1 %vm48_vm0, %v30_v11 }
   0xf   :  { %7 = vsyncpa [#allocation3], 0  ;;  %v16_v14 = vld [vmem:[%s1134_s0 + $0x20] sm:$0xff]  ;;  %v17_v16 = vld [vmem:[%s1134_s0 + $0x28] sm:$0xff] }
  0x10   :  { %v32_v15 = vld [vmem:[%s1134_s0 + $0xa0] sm:$0xff]  ;;  %817 = vmatmul.mubr.msk.f32.gmra.mrb[2].mxu0 %vm48_vm0, %v15_v12  ;;  %v33_v17 = vld [vmem:[%s1134_s0 + $0xa8] sm:$0xff]  ;;  %v18_v18 = vld [vmem:[%s1134_s0 + $0x30] sm:$0xff] }
  0x11   :  { %841 = vmatmul.mubr.msk.f32.gmra.mrb[2].mxu1 %vm48_vm0, %v31_v13  ;;  %819 = vmatprep.mubr.msk.f32.mxu0 %vm48_vm0, %v16_v14  ;;  %v34_v19 = vld [vmem:[%s1134_s0 + $0xb0] sm:$0xff]  ;;  %v19_v20 = vld [vmem:[%s1134_s0 + $0x38] sm:$0xff]  ;;  %v20_v22 = vld [vmem:[%s1134_s0 + $0x40] sm:$0xff] }
  0x12   :  { %843 = vmatprep.mubr.msk.f32.mxu1 %vm48_vm0, %v32_v15  ;;  %v35_v21 = vld [vmem:[%s1134_s0 + $0xb8] sm:$0xff]  ;;  %v36_v23 = vld [vmem:[%s1134_s0 + $0xc0] sm:$0xff]  ;;  %v21_v24 = vld [vmem:[%s1134_s0 + $0x48] sm:$0xff] }
  0x13   :  { %v37_v25 = vld [vmem:[%s1134_s0 + $0xc8] sm:$0xff]  ;;  %v22_v26 = vld [vmem:[%s1134_s0 + $0x50] sm:$0xff]  ;;  %v23_v28 = vld [vmem:[%s1134_s0 + $0x58] sm:$0xff] }
  0x14   :  { %820 = vmatmul.mubr.msk.f32.gmra.mrb[4].mxu0 %vm48_vm0, %v17_v16  ;;  %v38_v27 = vld [vmem:[%s1134_s0 + $0xd0] sm:$0xff]  ;;  %v39_v29 = vld [vmem:[%s1134_s0 + $0xd8] sm:$0xff]  ;;  %v24_v30 = vld [vmem:[%s1134_s0 + $0x60] sm:$0xff] }
  0x15   :  { %844 = vmatmul.mubr.msk.f32.gmra.mrb[4].mxu1 %vm48_vm0, %v33_v17  ;;  %822 = vmatprep.mubr.msk.f32.mxu0 %vm48_vm0, %v18_v18  ;;  %v40_v31 = vld [vmem:[%s1134_s0 + $0xe0] sm:$0xff]  ;;  %v25_v32 = vld [vmem:[%s1134_s0 + $0x68] sm:$0xff]  ;;  %v26_v34 = vld [vmem:[%s1134_s0 + $0x70] sm:$0xff] }
  0x16   :  { %846 = vmatprep.mubr.msk.f32.mxu1 %vm48_vm0, %v34_v19  ;;  %v41_v33 = vld [vmem:[%s1134_s0 + $0xe8] sm:$0xff]  ;;  %v42_v35 = vld [vmem:[%s1134_s0 + $0xf0] sm:$0xff]  ;;  %v27_v36 = vld [vmem:[%s1134_s0 + $0x78] sm:$0xff] }
  0x17   :  { %v43_v37 = vld [vmem:[%s1134_s0 + $0xf8] sm:$0xff]  ;;  %s964_s0 = smov [#allocation2]  }
  0x18   :  { %823 = vmatmul.mubr.msk.f32.gmra.mrb[6].mxu0 %vm48_vm0, %v19_v20  ;;  %s567_s22 = sshll.u32 %s964_s0, 4  ;;  %s568_s22 = int_to_ptr.vmem [resolvable:$true] %s567_s22 }
  0x19   :  { %847 = vmatmul.mubr.msk.f32.gmra.mrb[6].mxu1 %vm48_vm0, %v35_v21  ;;  %825 = vmatprep.mubr.msk.f32.mxu0 %vm48_vm0, %v20_v22  ;;  %s940_s23 = scalar_lea.vmem %s568_s22, 2048  ;;  %p945_p1 = scmp.lt.s32.totalorder %s568_s22, %s568_s22 }
  0x1a   :  { %849 = vmatprep.mubr.msk.f32.mxu1 %vm48_vm0, %v36_v23  ;;  %p941_p0 = scmp.ne.s32.totalorder %s568_s22, %s940_s23  ;;  %p946_p2 = scmp.lt.s32.totalorder %s940_s23, %s940_s23 }
  0x1c   :  { %826 = vmatmul.mubr.msk.f32.gmra.mrb[8].mxu0 %vm48_vm0, %v21_v24  ;;  %p947_p3 = por %p946_p2, %p945_p1 }
  0x1d   :  { %850 = vmatmul.mubr.msk.f32.gmra.mrb[8].mxu1 %vm48_vm0, %v37_v25  ;;  %828 = vmatprep.mubr.msk.f32.mxu0 %vm48_vm0, %v22_v26 }
  0x1e   :  { %852 = vmatprep.mubr.msk.f32.mxu1 %vm48_vm0, %v38_v27  ;;  %p948_p4 = pnand %p947_p3, %p941_p0 }
  0x20   :  { %829 = vmatmul.mubr.msk.f32.gmra.mrb[10].mxu0 %vm48_vm0, %v23_v28 }
  0x21   :  { %853 = vmatmul.mubr.msk.f32.gmra.mrb[10].mxu1 %vm48_vm0, %v39_v29  ;;  %831 = vmatprep.mubr.msk.f32.mxu0 %vm48_vm0, %v24_v30 }
  0x22   :  { %855 = vmatprep.mubr.msk.f32.mxu1 %vm48_vm0, %v40_v31 }
  0x24   :  { %832 = vmatmul.mubr.msk.f32.gmra.mrb[12].mxu0 %vm48_vm0, %v25_v32 }
  0x25   :  { %856 = vmatmul.mubr.msk.f32.gmra.mrb[12].mxu1 %vm48_vm0, %v41_v33  ;;  %834 = vmatprep.mubr.msk.f32.mxu0 %vm48_vm0, %v26_v34 }
  0x26   :  { %858 = vmatprep.mubr.msk.f32.mxu1 %vm48_vm0, %v42_v35 }
  0x28   :  { %835 = vmatmul.mubr.msk.f32.gmra.mrb[14].mxu0 %vm48_vm0, %v27_v36 }
  0x29   :  { %859 = vmatmul.mubr.msk.f32.gmra.mrb[14].mxu1 %vm48_vm0, %v43_v37 }
  0xdf   :  { %v815_v38 = vpop.f32.mrb[0].mxu0 }
  0xe0   :  { %v839_v39 = vpop.f32.mrb[0].mxu1  ;;  %876 = vtanh.f32 %v815_v38  ;;  %v211_v40 = vpop.f32.mrb[1].mxu0 }
  0xe1   :  { %v291_v41 = vpop.f32.mrb[1].mxu1  ;;  %878 = vtanh.f32 %v839_v39 }
  0xe2   :  { %880 = vtanh.f32 %v211_v40 }
  0xe3   :  { %882 = vtanh.f32 %v291_v41  ;;  %v818_v42 = vpop.f32.mrb[2].mxu0 }
  0xe4   :  { %v842_v43 = vpop.f32.mrb[2].mxu1  ;;  %884 = vtanh.f32 %v818_v42  ;;  %v221_v44 = vpop.f32.mrb[3].mxu0 }
  0xe5   :  { %v301_v45 = vpop.f32.mrb[3].mxu1  ;;  %886 = vtanh.f32 %v842_v43 }
  0xe6   :  { %888 = vtanh.f32 %v221_v44 }
  0xe7   :  { %890 = vtanh.f32 %v301_v45  ;;  %v821_v46 = vpop.f32.mrb[4].mxu0 }
  0xe8   :  { %v845_v47 = vpop.f32.mrb[4].mxu1  ;;  %892 = vtanh.f32 %v821_v46  ;;  %v231_v48 = vpop.f32.mrb[5].mxu0 }
  0xe9   :  { %v311_v49 = vpop.f32.mrb[5].mxu1  ;;  %894 = vtanh.f32 %v845_v47 }
  0xea   :  { %v877_v50 = vpop.eup %876  ;;  %896 = vtanh.f32 %v231_v48 }
  0xeb   :  { %v879_v51 = vpop.eup %878  ;;  %898 = vtanh.f32 %v311_v49  ;;  %v824_v52 = vpop.f32.mrb[6].mxu0 }
  0xec   :  { %v848_v53 = vpop.f32.mrb[6].mxu1  ;;  %v881_v54 = vpop.eup %880  ;;  %900 = vtanh.f32 %v824_v52 }
  0xed   :  { %v241_v55 = vpop.f32.mrb[7].mxu0  ;;  %v321_v56 = vpop.f32.mrb[7].mxu1  ;;  %v677_v58 = vpack.c.bf16 %v877_v50, %v881_v54  ;;  %902 = vtanh.f32 %v848_v53 }
  0xee   :  { %v883_v57 = vpop.eup %882  ;;  %904 = vtanh.f32 %v241_v55 }
  0xef   :  { %v885_v59 = vpop.eup %884  ;;  %v717_v60 = vpack.c.bf16 %v879_v51, %v883_v57  ;;  %678 = vst [vmem:[#allocation2] sm:$0xff] %v677_v58   ;;  %906 = vtanh.f32 %v321_v56  ;;  %v827_v62 = vpop.f32.mrb[8].mxu0 }
  0xf0   :  { %v887_v61 = vpop.eup %886  ;;  %v851_v63 = vpop.f32.mrb[8].mxu1  ;;  %908 = vtanh.f32 %v827_v62 }
  0xf1   :  { %v889_v0 = vpop.eup %888  ;;  %761 = vst [vmem:[#allocation2 + $0x40] sm:$0xff] %v717_v60   ;;  %v251_v1 = vpop.f32.mrb[9].mxu0  ;;  %910 = vtanh.f32 %v851_v63 }
  0xf2   :  { %v331_v2 = vpop.f32.mrb[9].mxu1  ;;  %v891_v3 = vpop.eup %890  ;;  %v682_v4 = vpack.c.bf16 %v885_v59, %v889_v0  ;;  %912 = vtanh.f32 %v251_v1 }
  0xf3   :  { %v893_v5 = vpop.eup %892  ;;  %v722_v6 = vpack.c.bf16 %v887_v61, %v891_v3  ;;  %914 = vtanh.f32 %v331_v2  ;;  %v830_v8 = vpop.f32.mrb[10].mxu0 }
  0xf4   :  { %v895_v7 = vpop.eup %894  ;;  %754 = vst [vmem:[#allocation2 + $0x8] sm:$0xff] %v682_v4   ;;  %v854_v9 = vpop.f32.mrb[10].mxu1  ;;  %916 = vtanh.f32 %v830_v8 }
  0xf5   :  { %v897_v10 = vpop.eup %896  ;;  %762 = vst [vmem:[#allocation2 + $0x48] sm:$0xff] %v722_v6   ;;  %v261_v11 = vpop.f32.mrb[11].mxu0  ;;  %918 = vtanh.f32 %v854_v9 }
  0xf6   :  { %v341_v12 = vpop.f32.mrb[11].mxu1  ;;  %v899_v13 = vpop.eup %898  ;;  %v687_v14 = vpack.c.bf16 %v893_v5, %v897_v10  ;;  %920 = vtanh.f32 %v261_v11 }
  0xf7   :  { %v901_v15 = vpop.eup %900  ;;  %v727_v16 = vpack.c.bf16 %v895_v7, %v899_v13  ;;  %922 = vtanh.f32 %v341_v12  ;;  %v833_v18 = vpop.f32.mrb[12].mxu0 }
  0xf8   :  { %v903_v17 = vpop.eup %902  ;;  %755 = vst [vmem:[#allocation2 + $0x10] sm:$0xff] %v687_v14   ;;  %v857_v19 = vpop.f32.mrb[12].mxu1  ;;  %924 = vtanh.f32 %v833_v18 }
  0xf9   :  { %v905_v20 = vpop.eup %904  ;;  %763 = vst [vmem:[#allocation2 + $0x50] sm:$0xff] %v727_v16   ;;  %v271_v21 = vpop.f32.mrb[13].mxu0  ;;  %926 = vtanh.f32 %v857_v19 }
  0xfa   :  { %v351_v22 = vpop.f32.mrb[13].mxu1  ;;  %v907_v23 = vpop.eup %906  ;;  %v692_v24 = vpack.c.bf16 %v901_v15, %v905_v20  ;;  %928 = vtanh.f32 %v271_v21 }
  0xfb   :  { %v909_v25 = vpop.eup %908  ;;  %v732_v26 = vpack.c.bf16 %v903_v17, %v907_v23  ;;  %930 = vtanh.f32 %v351_v22  ;;  %v836_v28 = vpop.f32.mrb[14].mxu0 }
  0xfc   :  { %v911_v27 = vpop.eup %910  ;;  %756 = vst [vmem:[#allocation2 + $0x18] sm:$0xff] %v692_v24   ;;  %v860_v29 = vpop.f32.mrb[14].mxu1  ;;  %932 = vtanh.f32 %v836_v28 }
  0xfd   :  { %v913_v30 = vpop.eup %912  ;;  %764 = vst [vmem:[#allocation2 + $0x58] sm:$0xff] %v732_v26   ;;  %v281_v31 = vpop.f32.mrb[15].mxu0  ;;  %934 = vtanh.f32 %v860_v29 }
  0xfe   :  { %v361_v32 = vpop.f32.mrb[15].mxu1  ;;  %v915_v33 = vpop.eup %914  ;;  %v697_v34 = vpack.c.bf16 %v909_v25, %v913_v30  ;;  %936 = vtanh.f32 %v281_v31 }
  0xff   :  { %v917_v35 = vpop.eup %916  ;;  %v737_v36 = vpack.c.bf16 %v911_v27, %v915_v33  ;;  %938 = vtanh.f32 %v361_v32 }
 0x100   :  { %v919_v37 = vpop.eup %918  ;;  %757 = vst [vmem:[#allocation2 + $0x20] sm:$0xff] %v697_v34  }
 0x101   :  { %v921_v38 = vpop.eup %920  ;;  %765 = vst [vmem:[#allocation2 + $0x60] sm:$0xff] %v737_v36  }
 0x102   :  { %v923_v39 = vpop.eup %922  ;;  %v702_v40 = vpack.c.bf16 %v917_v35, %v921_v38 }
 0x103   :  { %v925_v41 = vpop.eup %924  ;;  %v742_v42 = vpack.c.bf16 %v919_v37, %v923_v39 }
 0x104   :  { %v927_v43 = vpop.eup %926  ;;  %758 = vst [vmem:[#allocation2 + $0x28] sm:$0xff] %v702_v40  }
 0x105   :  { %v929_v44 = vpop.eup %928  ;;  %766 = vst [vmem:[#allocation2 + $0x68] sm:$0xff] %v742_v42  }
 0x106   :  { %v931_v45 = vpop.eup %930  ;;  %v707_v46 = vpack.c.bf16 %v925_v41, %v929_v44 }
 0x107   :  { %v933_v47 = vpop.eup %932  ;;  %v747_v48 = vpack.c.bf16 %v927_v43, %v931_v45 }
 0x108   :  { %v935_v49 = vpop.eup %934  ;;  %759 = vst [vmem:[#allocation2 + $0x30] sm:$0xff] %v707_v46  }
 0x109   :  { %v937_v50 = vpop.eup %936  ;;  %767 = vst [vmem:[#allocation2 + $0x70] sm:$0xff] %v747_v48  }
 0x10a   :  { %v939_v51 = vpop.eup %938  ;;  %v712_v52 = vpack.c.bf16 %v933_v47, %v937_v50 }
 0x10b   :  { %v752_v53 = vpack.c.bf16 %v935_v49, %v939_v51 }
 0x10c   :  { %760 = vst [vmem:[#allocation2 + $0x38] sm:$0xff] %v712_v52  }
 0x10d   :  { %768 = vst [vmem:[#allocation2 + $0x78] sm:$0xff] %v752_v53  }
 0x10e   :  { %951 = shalt.err (!%p948_p4)
}
 0x10f   :  { %s952_s26 = scalar_lea.hbm %s1136_s2, 2048 }
 0x110   :  { %p953_p5 = scmp.ne.s32.totalorder %s1136_s2, %s952_s26  ;;  %p956_p6 = scmp.lt.u32.totalorder %s952_s26, %s1136_s2 }
 0x112   :  { %p958_p7 = pnand %p956_p6, %p953_p5 }
 0x114   :  { %961 = shalt.err (!%p958_p7)
}
 0x115   :  { %s965_s3 = smov 64   ;;  %s966_s4 = smov 4  }
 0x116   :  { %573 = dma.vmem_to_hbm [thread:$0]  %s568_s22, 2048, %s1136_s2, [#allocation3], %s965_s3, %s965_s3, %s966_s4  }
 0x117   :  { %962 = dma.done.wait [#allocation3], 2048  }
 0x118   :  { %963 = vsyncadd [#allocation3], 4294965248 }
 0x119   :  { %577 = vsyncpa [#allocation3], 1 }

</bundles_post_ra>
